<compile_context>
chip_gen: v7x
topology: tpu7x:2x2x1
jax: 0.10.0
libtpu: 0.0.40
codegen_flags: <defaults>
</compile_context>

<pallas_src>
import functools

import jax
import jax.numpy as jnp
from jax.experimental import pallas as pl
from jax.experimental.pallas import tpu as pltpu


_LANE = 128


# ----------------------------------------------------------------------------
# Generation-aware VMEM planning
# ----------------------------------------------------------------------------
@functools.lru_cache(maxsize=1)
def _vmem_plan():
    """Returns (planning_budget_bytes, vmem_limit_bytes, row_tile_cap)."""
    cap = 64 * 1024 * 1024                        # conservative default (v7x)
    try:
        info = pltpu.get_tpu_info()
        cap = int(getattr(info, "vmem_capacity_bytes", cap) or cap)
    except Exception:
        pass
    budget = int(cap * 0.70)                      # what the tile planner may use
    limit = int(cap * 0.85)                       # scoped-VMEM limit (headroom kept)
    tm_cap = 1024 if cap >= 96 * 1024 * 1024 else 512   # v5e/v6e: 128 MiB, v7x: 64 MiB
    return budget, limit, tm_cap


def _choose_row_tile(M, cap):
    """Pick the row tile tm (multiple of 8, <= cap) and padded M.

    Preference order:
      1) largest divisor >= 256 giving an EVEN grid-step count (v7x 2-TC balance)
      2) largest divisor giving >= 2 steps
      3) any divisor
      4) ragged fallback: pad M up to a multiple of 256 (never tiny tiles).
    """
    cands = [c for c in (1024, 512, 256, 128, 64, 32, 16, 8) if c <= cap]
    divisors = [c for c in cands if M % c == 0]
    for c in divisors:
        if c >= 256 and (M // c) % 2 == 0:
            return c, M
    for c in divisors:
        if M // c >= 2:
            return c, M
    if divisors:
        return divisors[0], M
    tm = min(256, cap)
    return tm, pl.cdiv(M, tm) * tm


def _plan_conv_tiles(M, Kp, CoutP, in_bytes, out_bytes, budget, tm_cap):
    """Choose (tm, Mp, tk) so double-buffered blocks + accumulator fit VMEM."""
    tm, Mp = _choose_row_tile(M, tm_cap)
    q = Kp // _LANE
    tk_cands = [_LANE * d for d in range(q, 0, -1) if q % d == 0]

    def footprint(tm_, tk_):
        return (2 * tm_ * tk_ * in_bytes          # x2 block, double-buffered
                + 2 * tk_ * CoutP * in_bytes      # w2 block, double-buffered
                + tm_ * CoutP * 4                 # f32 accumulator scratch
                + 2 * tm_ * CoutP * out_bytes     # output block, double-buffered
                + 2 * CoutP * 4)                  # bias

    for tk in tk_cands:
        if footprint(tm, tk) <= budget:
            return tm, Mp, tk
    tk = _LANE
    while tm > 8 and footprint(tm, tk) > budget:  # tm stays a power of two -> still divides Mp
        tm //= 2
    return tm, Mp, tk


# ----------------------------------------------------------------------------
# Conv branch: out[tm, CoutP] = sum_k x[tm, tk] @ w[tk, CoutP]  (+ bias)
# ----------------------------------------------------------------------------
def _conv_mm_kernel(x_ref, w_ref, b_ref, o_ref, acc_ref):
    k = pl.program_id(1)

    @pl.when(k == 0)
    def _():
        acc_ref[...] = jnp.zeros_like(acc_ref)

    acc_ref[...] += jnp.dot(x_ref[...], w_ref[...],
                            preferred_element_type=jnp.float32)

    @pl.when(k == pl.num_programs(1) - 1)
    def _():
        o_ref[...] = (acc_ref[...] + b_ref[...]).astype(o_ref.dtype)


def _conv_as_matmul(x2, w2, b2, out_dtype):
    """x2: [M, Kp] folded patches, w2: [Kp, CoutP], b2: [1, CoutP] -> [M, CoutP]."""
    M, Kp = x2.shape
    CoutP = w2.shape[1]
    budget, limit, tm_cap = _vmem_plan()
    in_bytes = x2.dtype.itemsize
    out_bytes = jnp.dtype(out_dtype).itemsize
    tm, Mp, tk = _plan_conv_tiles(M, Kp, CoutP, in_bytes, out_bytes, budget, tm_cap)
    if Mp != M:
        x2 = jnp.pad(x2, ((0, Mp - M), (0, 0)))
    nk = Kp // tk

    out = pl.pallas_call(
        _conv_mm_kernel,
        out_shape=jax.ShapeDtypeStruct((Mp, CoutP), out_dtype),
        grid=(Mp // tm, nk),
        in_specs=[
            pl.BlockSpec((tm, tk), lambda i, k: (i, k)),
            # nk == 1  -> constant block index -> weights stay VMEM-resident.
            # nk  > 1  -> weights stream in K chunks (large-channel layers).
            pl.BlockSpec((tk, CoutP), lambda i, k: (k, 0)),
            pl.BlockSpec((1, CoutP), lambda i, k: (0, 0)),
        ],
        out_specs=pl.BlockSpec((tm, CoutP), lambda i, k: (i, 0)),
        scratch_shapes=[pltpu.VMEM((tm, CoutP), jnp.float32)],
        compiler_params=pltpu.CompilerParams(
            dimension_semantics=("parallel", "arbitrary"),
            vmem_limit_bytes=limit,
        ),
    )(x2, w2, b2)
    return out[:M]


def _conv3x3_s2(x_nhwc, weight, bias, out_dtype, compute_dtype):
    N, H, W, C = x_nhwc.shape
    Cout = weight.shape[0]
    stride, pad, k = 2, 1, 3
    Ho = (H + 2 * pad - k) // stride + 1
    Wo = (W + 2 * pad - k) // stride + 1

    cdt = compute_dtype or x_nhwc.dtype
    # Cast BEFORE padding / im2col so the slab (and weight DMA) is written in
    # the narrow dtype; accumulation in the kernel stays f32.
    x_c = x_nhwc.astype(cdt)
    w_c = weight.astype(cdt)

    xp = jnp.pad(x_c, ((0, 0), (pad, pad), (pad, pad), (0, 0)))

    # im2col with the 9 taps folded into the contraction dim: [M, 9*C].
    cols = [xp[:, ky:ky + stride * Ho:stride, kx:kx + stride * Wo:stride, :]
            for ky in range(k) for kx in range(k)]
    patches = jnp.stack(cols, axis=3)                    # [N, Ho, Wo, 9, C]
    M = N * Ho * Wo
    K = k * k * C
    x2 = patches.reshape(M, K)
    # [Cout, Cin, ky, kx] -> [(ky, kx, Cin), Cout] (matches x2 column order).
    w2 = jnp.transpose(w_c, (2, 3, 1, 0)).reshape(K, Cout)

    # Lane-dense padding: Cout (output lanes) and K (x2 lanes / contraction).
    CoutP = _LANE * pl.cdiv(Cout, _LANE)
    Kp = _LANE * pl.cdiv(K, _LANE)
    if CoutP != Cout:
        w2 = jnp.pad(w2, ((0, 0), (0, CoutP - Cout)))
        b = jnp.pad(bias, (0, CoutP - Cout))
    else:
        b = bias
    if Kp != K:
        x2 = jnp.pad(x2, ((0, 0), (0, Kp - K)))
        w2 = jnp.pad(w2, ((0, Kp - K), (0, 0)))
    b2 = b.reshape(1, CoutP).astype(jnp.float32)

    out_flat = _conv_as_matmul(x2, w2, b2, out_dtype)    # [M, CoutP]
    return out_flat[:, :Cout].reshape(N, Ho, Wo, Cout)


# ----------------------------------------------------------------------------
# AvgPool branch: input read once per block, 2x2 reduction done in-kernel (VPU)
# ----------------------------------------------------------------------------
def _avgpool_kernel(x_ref, o_ref):
    _, th, wo, c = o_ref.shape
    x = x_ref[0].astype(jnp.float32)          # (2*th, Wo, 2C)
    xr = x.reshape(th, 2, wo, 2 * c)          # leading-dims-only reshape (free)
    s = xr[:, 0] + xr[:, 1]                   # sum of the row pair  -> (th, Wo, 2C)
    out = 0.25 * (s[..., :c] + s[..., c:])    # sum of the col pair  -> (th, Wo, C)
    o_ref[0] = out.astype(o_ref.dtype)


def _avgpool_2x2(x_nhwc):
    N, H, W, C = x_nhwc.shape
    Ho, Wo = H // 2, W // 2                   # AvgPool2d(2,2) floors odd H/W
    x = x_nhwc[:, :2 * Ho, :2 * Wo, :]
    # Free view: fold the W-pair into the lane dim -> [N, 2*Ho, Wo, 2C].
    x4 = x.reshape(N, 2 * Ho, Wo, 2 * C)

    budget, limit, _ = _vmem_plan()
    ib = x.dtype.itemsize

    def footprint(th):
        return 2 * (2 * th * Wo * 2 * C * ib) + 2 * (th * Wo * C * ib)

    th = 1
    for cand in range(Ho, 0, -1):
        if Ho % cand == 0 and footprint(cand) <= budget:
            th = cand
            break

    out = pl.pallas_call(
        _avgpool_kernel,
        out_shape=jax.ShapeDtypeStruct((N, Ho, Wo, C), x.dtype),
        grid=(N, Ho // th),
        in_specs=[pl.BlockSpec((1, 2 * th, Wo, 2 * C), lambda n, i: (n, i, 0, 0))],
        out_specs=pl.BlockSpec((1, th, Wo, C), lambda n, i: (n, i, 0, 0)),
        compiler_params=pltpu.CompilerParams(
            dimension_semantics=("parallel", "parallel"),
            vmem_limit_bytes=limit,
        ),
    )(x4)
    return out


# ----------------------------------------------------------------------------
# Downsample forward (dims=2)
# ----------------------------------------------------------------------------
@functools.partial(jax.jit,
                   static_argnames=("use_conv", "compute_dtype", "data_format"))
def downsample_forward(x, weight, bias, use_conv=True,
                       compute_dtype=jnp.bfloat16, data_format="NCHW"):
    """Equivalent of Downsample.forward for dims=2.

    x       : [N, C, H, W] (data_format="NCHW", PyTorch) or [N, H, W, C] ("NHWC")
    weight  : [Cout, Cin, 3, 3]   (only used when use_conv=True)
    bias    : [Cout]
    compute_dtype : matmul input dtype (default bf16; f32 accumulation kept).
                    Pass jnp.float32 for bit-faithful f32 compute.
    returns : downsampled tensor in the same data_format.
    """
    if data_format == "NCHW":
        # Layout glue; pass data_format="NHWC" to skip both transposes.
        x_nhwc = jnp.transpose(x, (0, 2, 3, 1))
    else:
        x_nhwc = x

    if use_conv:
        out = _conv3x3_s2(x_nhwc, weight, bias, x.dtype, compute_dtype)
    else:
        out = _avgpool_2x2(x_nhwc)

    if data_format == "NCHW":
        return jnp.transpose(out, (0, 3, 1, 2))
    return out


# ----------------------------------------------------------------------------
# Demo / correctness check
# ----------------------------------------------------------------------------
if __name__ == "__main__":
    key = jax.random.PRNGKey(0)
    k_x, k_w, k_b = jax.random.split(key, 3)

    N, C, H, W = 2, 4, 16, 16        # Downsample(channels=4, use_conv=True)
    Cout = C                         # out_channels=None -> channels

    x = jax.random.normal(k_x, (N, C, H, W), dtype=jnp.float32)
    weight = 0.1 * jax.random.normal(k_w, (Cout, C, 3, 3), dtype=jnp.float32)
    bias = 0.1 * jax.random.normal(k_b, (Cout,), dtype=jnp.float32)

    y_ref = jax.lax.conv_general_dilated(
        x, weight, window_strides=(2, 2), padding=((1, 1), (1, 1)),
        dimension_numbers=("NCHW", "OIHW", "NCHW"),
    ) + bias[None, :, None, None]

    # --- use_conv=True, f32 compute path (tight tolerance) ---
    y32 = jax.block_until_ready(
        downsample_forward(x, weight, bias, use_conv=True,
                           compute_dtype=jnp.float32))
    assert y32.shape == (N, Cout, H // 2, W // 2), y32.shape
    assert jnp.allclose(y32, y_ref, atol=1e-4, rtol=1e-4), \
        float(jnp.abs(y32 - y_ref).max())

    # --- use_conv=True, default bf16 compute (cast before im2col), f32 accum ---
    ybf = jax.block_until_ready(downsample_forward(x, weight, bias, use_conv=True))
    assert ybf.shape == (N, Cout, H // 2, W // 2), ybf.shape
    assert jnp.allclose(ybf, y_ref, atol=5e-2, rtol=5e-2), \
        float(jnp.abs(ybf - y_ref).max())

    # --- use_conv=False path (AvgPool2d(2, 2)) ---
    p = jax.block_until_ready(downsample_forward(x, weight, bias, use_conv=False))
    p_ref = x.reshape(N, C, H // 2, 2, W // 2, 2).mean(axis=(3, 5))
    assert p.shape == (N, C, H // 2, W // 2), p.shape
    assert jnp.allclose(p, p_ref, atol=1e-5, rtol=1e-5), \
        float(jnp.abs(p - p_ref).max())

    print("KERNEL_OK")
</pallas_src>

<mosaic_0001>
module attributes {stable_mosaic.version = 11 : i64} {
  func.func @_conv_mm_kernel(%arg0: i32, %arg1: i32, %arg2: memref<64x128xf32, #tpu.memory_space<vmem>>, %arg3: memref<128x128xf32, #tpu.memory_space<vmem>>, %arg4: memref<1x128xf32, #tpu.memory_space<vmem>>, %arg5: memref<64x128xf32, #tpu.memory_space<vmem>>, %arg6: memref<64x128xf32, #tpu.memory_space<vmem>>) attributes {dimension_semantics = [#tpu.dimension_semantics<parallel>, #tpu.dimension_semantics<arbitrary>], iteration_bounds = array<i64: 2, 1>, scalar_prefetch = 0 : i64, scratch_operands = 1 : i64, tpu.core_type = #tpu.core_type<tc>, window_params = [{transform_indices = @transform_0, window_bounds = array<i64: 64, 128>}, {transform_indices = @transform_1, window_bounds = array<i64: 128, 128>}, {pipeline_mode = #tpu.pipeline_mode<synchronous>, transform_indices = @transform_2, window_bounds = array<i64: 1, 128>}, {transform_indices = @transform_3, window_bounds = array<i64: 64, 128>}]} {
    %c0_i32 = arith.constant 0 : i32
    %0 = arith.cmpi eq, %arg1, %c0_i32 : i32
    %1 = arith.extui %0 : i1 to i32
    %c0_i32_0 = arith.constant 0 : i32
    %2 = arith.cmpi ne, %1, %c0_i32_0 : i32
    scf.if %2 {
      %cst_10 = arith.constant 0.000000e+00 : f32
      %12 = vector.broadcast %cst_10 : f32 to vector<64x128xf32>
      %c0_11 = arith.constant 0 : index
      %c0_12 = arith.constant 0 : index
      %13 = vector.load %arg6[%c0_11, %c0_12] : memref<64x128xf32, #tpu.memory_space<vmem>>, vector<64x128xf32>
      tpu.vector_store %arg6[%c0_11, %c0_12], %12 {strides = array<i32>} : memref<64x128xf32, #tpu.memory_space<vmem>>, vector<64x128xf32>,
    } else {
    }
    %c0 = arith.constant 0 : index
    %c0_1 = arith.constant 0 : index
    %3 = vector.load %arg6[%c0, %c0_1] : memref<64x128xf32, #tpu.memory_space<vmem>>, vector<64x128xf32>
    %c0_2 = arith.constant 0 : index
    %c0_3 = arith.constant 0 : index
    %4 = vector.load %arg2[%c0_2, %c0_3] : memref<64x128xf32, #tpu.memory_space<vmem>>, vector<64x128xf32>
    %c0_4 = arith.constant 0 : index
    %c0_5 = arith.constant 0 : index
    %5 = vector.load %arg3[%c0_4, %c0_5] : memref<128x128xf32, #tpu.memory_space<vmem>>, vector<128x128xf32>
    %cst = arith.constant dense<0.000000e+00> : vector<64x128xf32>
    %6 = tpu.matmul %4, %5, %cst {dimension_numbers = #tpu.dot_dimension_numbers<[1], [0], [0], [1], [0, 0, 1, 1], [], []>} : vector<64x128xf32>, vector<128x128xf32>, vector<64x128xf32> -> vector<64x128xf32>
    %7 = arith.addf %3, %6 : vector<64x128xf32>
    %c0_6 = arith.constant 0 : index
    %c0_7 = arith.constant 0 : index
    %8 = vector.load %arg6[%c0_6, %c0_7] : memref<64x128xf32, #tpu.memory_space<vmem>>, vector<64x128xf32>
    tpu.vector_store %arg6[%c0_6, %c0_7], %7 {strides = array<i32>} : memref<64x128xf32, #tpu.memory_space<vmem>>, vector<64x128xf32>,
    %c0_i32_8 = arith.constant 0 : i32
    %9 = arith.cmpi eq, %arg1, %c0_i32_8 : i32
    %10 = arith.extui %9 : i1 to i32
    %c0_i32_9 = arith.constant 0 : i32
    %11 = arith.cmpi ne, %10, %c0_i32_9 : i32
    scf.if %11 {
      %c0_10 = arith.constant 0 : index
      %c0_11 = arith.constant 0 : index
      %12 = vector.load %arg6[%c0_10, %c0_11] : memref<64x128xf32, #tpu.memory_space<vmem>>, vector<64x128xf32>
      %c0_12 = arith.constant 0 : index
      %c0_13 = arith.constant 0 : index
      %13 = vector.load %arg4[%c0_12, %c0_13] : memref<1x128xf32, #tpu.memory_space<vmem>>, vector<1x128xf32>
      %14 = vector.broadcast %13 : vector<1x128xf32> to vector<64x128xf32>
      %15 = arith.addf %12, %14 : vector<64x128xf32>
      %c0_14 = arith.constant 0 : index
      %c0_15 = arith.constant 0 : index
      %16 = vector.load %arg5[%c0_14, %c0_15] : memref<64x128xf32, #tpu.memory_space<vmem>>, vector<64x128xf32>
      tpu.vector_store %arg5[%c0_14, %c0_15], %15 {strides = array<i32>} : memref<64x128xf32, #tpu.memory_space<vmem>>, vector<64x128xf32>,
    } else {
    }
    return
  }
  func.func @transform_0(%arg0: i32, %arg1: i32) -> (i32, i32) {
    %c0_i32 = arith.constant 0 : i32
    return %arg0, %arg1 : i32, i32
  }
  func.func @transform_1(%arg0: i32, %arg1: i32) -> (i32, i32) {
    %c0_i32 = arith.constant 0 : i32
    %c0_i32_0 = arith.constant 0 : i32
    return %arg1, %c0_i32 : i32, i32
  }
  func.func @transform_2(%arg0: i32, %arg1: i32) -> (i32, i32) {
    %c0_i32 = arith.constant 0 : i32
    %c0_i32_0 = arith.constant 0 : i32
    %c0_i32_1 = arith.constant 0 : i32
    return %c0_i32, %c0_i32_0 : i32, i32
  }
  func.func @transform_3(%arg0: i32, %arg1: i32) -> (i32, i32) {
    %c0_i32 = arith.constant 0 : i32
    %c0_i32_0 = arith.constant 0 : i32
    return %arg0, %c0_i32 : i32, i32
  }
}

</mosaic_0001>

<bundles_post_ra>
// kernel: downsample_forward.1
= control target key start
LH: loop header
LB: loop body
LE: loop exit
PB: predicated region body
PF: predicated region fallthrough
CT: control target
= control target key end

     0   :  { %s698_s12 = smov 0   ;;  %s700_s13 = smov 0   ;;  %s799_s0 = inlined_call_operand.vmem [shape: f32[128,128], index: 0, kind: input, shape index: {}]   ;;  %s800_s1 = inlined_call_operand.vmem [shape: f32[128,128], index: 1, kind: input, shape index: {}]   ;;  %s801_s2 = inlined_call_operand.vmem [shape: f32[1,128], index: 2, kind: input, shape index: {}]   ;;  %s802_s3 = inlined_call_operand.vmem [shape: f32[128,128], index: 3, kind: output, shape index: {}]  }
   0x1   :  { %s702_s14 = smov 0  }
   0x2 LB: > { %s25_s15 = sadd.s32 1, %s672_s13  ;;  %p506_p0 = scmp.ge.s32.totalorder %s676_s14, 1  ;;  %s676_s14 = sphi %s702_s14, %s13_s14   ;;  %s672_s13 = sphi %s700_s13, %s804_s13   ;;  %s668_s12 = sphi %s698_s12, %s803_s12  }
   0x3   : > { %p27_p1 = scmp.ge.s32.totalorder %s25_s15, 2  ;;  %p166_p2 = scmp.lt.s32.totalorder %s676_s14, 3 }
   0x5   : > { %s806_s15 = smov (%p27_p1, %s25_s15), 0  ;;  %p167_p3 = pnand %p506_p0, %p166_p2 }
   0x6   : > { %v247_v0 = vld [vmem:[%s800_s1] sm:$0xff] (!%p167_p3)  ;;  %v248_v1 = vld [vmem:[%s800_s1 + $0x8] sm:$0xff] (!%p167_p3)  ;;  %v249_v2 = vld [vmem:[%s800_s1 + $0x10] sm:$0xff] (!%p167_p3)  ;;  %s507_s22 = sshll.u32 (!%p167_p3), %s668_s12, 3 }
   0x7   : > { %170 = sbr.rel (%p167_p3) target bundleno = 262 (0x106), region = 32  ;;  %v582_v3 = vpack.c.bf16 (!%p167_p3), %v248_v1, %v247_v0  ;;  %v250_v4 = vld [vmem:[%s800_s1 + $0x18] sm:$0xff] (!%p167_p3)  ;;  %p199_p4 = scmp.lt.s32.totalorder (!%p167_p3), %s507_s22, 15  ;;  %v251_v6 = vld [vmem:[%s800_s1 + $0x20] sm:$0xff] (!%p167_p3)  ;;  %v252_v7 = vld [vmem:[%s800_s1 + $0x28] sm:$0xff] (!%p167_p3) }
   0x8   : > { %v586_v5 = vpack.c.bf16 (!%p167_p3), %v250_v4, %v249_v2  ;;  %v590_v8 = vpack.c.bf16 (!%p167_p3), %v252_v7, %v251_v6  ;;  %v253_v9 = vld [vmem:[%s800_s1 + $0x30] sm:$0xff] (!%p167_p3)  ;;  %v254_v10 = vld [vmem:[%s800_s1 + $0x38] sm:$0xff] (!%p167_p3)  ;;  %v255_v14 = vld [vmem:[%s800_s1 + $0x40] sm:$0xff] (!%p167_p3) }
   0x9   : > { %583 = vmatprep.subr.bf16.mxu0 (!%p167_p3), %v582_v3  ;;  %614 = vmatprep.subr.bf16.mxu1 (!%p167_p3), %v582_v3  ;;  %v594_v13 = vpack.c.bf16 (!%p167_p3), %v254_v10, %v253_v9  ;;  %v256_v15 = vld [vmem:[%s800_s1 + $0x48] sm:$0xff] (!%p167_p3)  ;;  %v257_v17 = vld [vmem:[%s800_s1 + $0x50] sm:$0xff] (!%p167_p3)  ;;  %v258_v18 = vld [vmem:[%s800_s1 + $0x58] sm:$0xff] (!%p167_p3) }
   0xa   : > { %585 = vmatpush3.bf16.msra.mxu0 (!%p167_p3), %v582_v3  ;;  %622 = vmatpush3.bf16.msra.mxu1 (!%p167_p3), %v582_v3  ;;  %v598_v16 = vpack.c.bf16 (!%p167_p3), %v256_v15, %v255_v14  ;;  %v602_v19 = vpack.c.bf16 (!%p167_p3), %v258_v18, %v257_v17  ;;  %v259_v20 = vld [vmem:[%s800_s1 + $0x60] sm:$0xff] (!%p167_p3)  ;;  %v260_v21 = vld [vmem:[%s800_s1 + $0x68] sm:$0xff] (!%p167_p3)  ;;  %v261_v23 = vld [vmem:[%s800_s1 + $0x70] sm:$0xff] (!%p167_p3) }
   0xb   : > { %587 = vmatprep.subr.bf16.mxu0 (!%p167_p3), %v586_v5  ;;  %615 = vmatprep.subr.bf16.mxu1 (!%p167_p3), %v586_v5  ;;  %v606_v22 = vpack.c.bf16 (!%p167_p3), %v260_v21, %v259_v20  ;;  %v262_v24 = vld [vmem:[%s800_s1 + $0x78] sm:$0xff] (!%p167_p3)  ;;  %v511_v32 = vld [vmem:[%s801_s2] ss:$0 sm:$0xff] (!%p167_p3) }
   0xc   : > { %v610_v25 = vpack.c.bf16 (!%p167_p3), %v262_v24, %v261_v23 }
   0xe   : > { %s808_s22 = smov (!%p199_p4, %s507_s22), 15  ;;  %589 = vmatpush3.bf16.msra.mxu0 %v586_v5  ;;  %623 = vmatpush3.bf16.msra.mxu1 %v586_v5 }
   0xf   : > { %s508_s29 = sshll.u32 %s808_s22, 3  ;;  %591 = vmatprep.subr.bf16.mxu0 %v590_v8  ;;  %616 = vmatprep.subr.bf16.mxu1 %v590_v8 }
  0x10   : > { %s748_s9 = scalar_lea.vmem %s799_s0, %s508_s29  ;;  %s217_s8 = scalar_lea.vmem %s802_s3, %s508_s29 }
  0x11   : > { %v239_v11 = vld [vmem:[%s748_s9] sm:$0xff]  ;;  %v240_v26 = vld [vmem:[%s748_s9 + $0x8] sm:$0xff]  ;;  %v241_v28 = vld [vmem:[%s748_s9 + $0x10] sm:$0xff] }
  0x12   : > { %v243_v12 = vld [vmem:[%s748_s9 + $0x20] sm:$0xff]  ;;  %570 = vmatprep.mubr.f32.mxu0 %v239_v11  ;;  %593 = vmatpush3.bf16.msra.mxu0 %v590_v8  ;;  %v244_v27 = vld [vmem:[%s748_s9 + $0x28] sm:$0xff]  ;;  %v245_v29 = vld [vmem:[%s748_s9 + $0x30] sm:$0xff] }
  0x13   : > { %576 = vmatprep.mubr.f32.mxu1 %v243_v12  ;;  %624 = vmatpush3.bf16.msra.mxu1 %v590_v8  ;;  %v242_v30 = vld [vmem:[%s748_s9 + $0x18] sm:$0xff] }
  0x14   : > { %595 = vmatprep.subr.bf16.mxu0 %v594_v13  ;;  %617 = vmatprep.subr.bf16.mxu1 %v594_v13  ;;  %v246_v31 = vld [vmem:[%s748_s9 + $0x38] sm:$0xff] }
  0x16   : > { %597 = vmatpush3.bf16.msra.mxu0 %v594_v13 }
  0x17   : > { %625 = vmatpush3.bf16.msra.mxu1 %v594_v13  ;;  %599 = vmatprep.subr.bf16.mxu0 %v598_v16 }
  0x18   : > { %618 = vmatprep.subr.bf16.mxu1 %v598_v16 }
  0x1a   : > { %601 = vmatpush3.bf16.msra.mxu0 %v598_v16 }
  0x1b   : > { %626 = vmatpush3.bf16.msra.mxu1 %v598_v16  ;;  %603 = vmatprep.subr.bf16.mxu0 %v602_v19 }
  0x1c   : > { %619 = vmatprep.subr.bf16.mxu1 %v602_v19 }
  0x1e   : > { %605 = vmatpush3.bf16.msra.mxu0 %v602_v19 }
  0x1f   : > { %627 = vmatpush3.bf16.msra.mxu1 %v602_v19  ;;  %607 = vmatprep.subr.bf16.mxu0 %v606_v22 }
  0x20   : > { %620 = vmatprep.subr.bf16.mxu1 %v606_v22 }
  0x22   : > { %609 = vmatpush3.bf16.msra.mxu0 %v606_v22 }
  0x23   : > { %628 = vmatpush3.bf16.msra.mxu1 %v606_v22  ;;  %611 = vmatprep.subr.bf16.mxu0 %v610_v25 }
  0x24   : > { %621 = vmatprep.subr.bf16.mxu1 %v610_v25 }
  0x26   : > { %613 = vmatpush3.bf16.msra.mxu0 %v610_v25 }
  0x27   : > { %629 = vmatpush3.bf16.msra.mxu1 %v610_v25 }
  0x29   : > { %571 = vmatmul.mubr.f32.vlgmr.msra.gmra.mrb[0].mxu0 %v240_v26 }
  0x2a   : > { %577 = vmatmul.mubr.f32.vlgmr.msra.gmra.mrb[0].mxu1 %v244_v27  ;;  %573 = vmatprep.mubr.f32.mxu0 %v241_v28 }
  0x2b   : > { %579 = vmatprep.mubr.f32.mxu1 %v245_v29 }
  0x2d   : > { %574 = vmatmul.mubr.f32.gmra.mrb[2].mxu0 %v242_v30 }
  0x2e   : > { %580 = vmatmul.mubr.f32.gmra.mrb[2].mxu1 %v246_v31 }
  0xfc   : > { %v572_v33 = vpop.f32.mrb[0].mxu0 }
  0xfd   : > { %v578_v34 = vpop.f32.mrb[0].mxu1  ;;  %v403_v35 = vadd.f32 %v572_v33, %v511_v32  ;;  %v329_v37 = vpop.f32.mrb[1].mxu0 }
  0xfe   : > { %v407_v36 = vadd.f32 %v578_v34, %v511_v32  ;;  %v349_v38 = vpop.f32.mrb[1].mxu1  ;;  %v402_v39 = vadd.f32 %v511_v32, %v329_v37 }
  0xff   : > { %v406_v40 = vadd.f32 %v511_v32, %v349_v38  ;;  %411 = vst [vmem:[%s217_s8 + $0x8] sm:$0xff] %v403_v35 }
 0x100   : > { %415 = vst [vmem:[%s217_s8 + $0x28] sm:$0xff] %v407_v36  ;;  %410 = vst [vmem:[%s217_s8] sm:$0xff] %v402_v39  ;;  %v575_v41 = vpop.f32.mrb[2].mxu0 }
 0x101   : > { %414 = vst [vmem:[%s217_s8 + $0x20] sm:$0xff] %v406_v40  ;;  %v581_v42 = vpop.f32.mrb[2].mxu1  ;;  %v405_v43 = vadd.f32 %v575_v41, %v511_v32  ;;  %v339_v45 = vpop.f32.mrb[3].mxu0 }
 0x102   : > { %v409_v44 = vadd.f32 %v581_v42, %v511_v32  ;;  %v359_v46 = vpop.f32.mrb[3].mxu1  ;;  %v404_v47 = vadd.f32 %v511_v32, %v339_v45 }
 0x103   : > { %v408_v48 = vadd.f32 %v511_v32, %v359_v46  ;;  %413 = vst [vmem:[%s217_s8 + $0x18] sm:$0xff] %v405_v43 }
 0x104   : > { %417 = vst [vmem:[%s217_s8 + $0x38] sm:$0xff] %v409_v44  ;;  %412 = vst [vmem:[%s217_s8 + $0x10] sm:$0xff] %v404_v47 }
 0x105   : > { %416 = vst [vmem:[%s217_s8 + $0x30] sm:$0xff] %v408_v48 }
 0x106 PF: > { %s13_s14 = sadd.s32 1, %s676_s14   ;;  %s803_s12 = smov %s672_s13 }
 0x107   : > { %p10_p5 = scmp.ge.s32.totalorder %s13_s14, 4   ;;  %s804_s13 = smov %s806_s15 }
 0x109   :  { %12 = sbr.rel (!%p10_p5) target bundleno = 2 (0x2), region = 73 }

</bundles_post_ra>
